<compile_context>
chip_gen: v5e
topology: v5e:2x2
jax: 0.10.0
libtpu: 0.0.40
codegen_flags: <defaults>
</compile_context>

<pallas_src>
import functools
import math

import jax
import jax.numpy as jnp
from jax.experimental import pallas as pl
from jax.experimental.pallas import tpu as pltpu

_LANE = 128
_SUBLANE_BF16 = 16


def _round_up(n, m):
    return ((n + m - 1) // m) * m


def _pad_2d(a, rows, cols):
    pr, pc = rows - a.shape[0], cols - a.shape[1]
    if pr == 0 and pc == 0:
        return a
    return jnp.pad(a, ((0, pr), (0, pc)))


def _pad_row(v, cols):
    return _pad_2d(v.reshape(1, -1), 1, cols)


def _poly_mlp_kernel(x_ref, w13_ref, b13_ref, g1_ref, be1_ref, g3_ref, be3_ref,
                     wc_ref, wl_ref, bout_ref, o_ref, *, hidden, hidden_p, alpha, eps):
    f32 = jnp.float32
    x = x_ref[...]                                          # (tm, Cin) bf16, unpadded Cin

    # One MXU pass over x yields both the U1 branch and the folded U2@U3 branch
    # (N = 2*H_p, bf16 operands, f32 accumulation).
    h13 = jnp.dot(x, w13_ref[...], preferred_element_type=f32) + b13_ref[...]
    h1 = h13[:, :hidden_p]                                  # lane-aligned slices
    h3 = h13[:, hidden_p:]

    inv_h = 1.0 / hidden
    n_pad = float(hidden_p - hidden)

    def layernorm(h, g, b):
        # Padded columns of h are exactly 0 (zero-padded weight cols / bias entries),
        # so the mean is exact; the variance only needs a scalar correction for the
        # pad columns (each contributes (0 - mean)^2).  Padded g/b entries are 0, so
        # padded output columns come out exactly 0 as well.
        mean = jnp.sum(h, axis=-1, keepdims=True) * inv_h
        d = h - mean
        var = (jnp.sum(d * d, axis=-1, keepdims=True) - n_pad * (mean * mean)) * inv_h
        return d * jax.lax.rsqrt(var + eps) * g + b

    n1 = layernorm(h1, g1_ref[...], be1_ref[...])
    n3 = layernorm(h3, g3_ref[...], be3_ref[...])
    z = n1 + alpha * (n1 * n3)                              # out1 + alpha*out_so

    # C(...) and merged-LoRA branches.  (1-alpha_lora)/alpha_lora and bc were
    # pre-folded into wc/wl/bout on the host, so the combine is two dots + one add.
    out = jnp.dot(z.astype(wc_ref.dtype), wc_ref[...], preferred_element_type=f32)
    out = out + jnp.dot(x, wl_ref[...], preferred_element_type=f32)
    o_ref[...] = (out + bout_ref[...]).astype(o_ref.dtype)


@functools.partial(jax.jit, static_argnames=(
    "task", "alpha", "alpha_lora", "eps", "tm", "compute_dtype", "out_dtype"))
def poly_mlp_weighted_skiplora(x, params, *, task, alpha=1.0, alpha_lora=1.0,
                               eps=1e-6, tm=512, compute_dtype=jnp.bfloat16,
                               out_dtype=None):
    """x: (B, h, w, Cin) channels-last. Weights pre-transposed to (in, out) layout.

    tm: row tile (rounded to a multiple of 16). ~512 is a good default on v6e/v7x,
    256-512 on v5e.  Pass out_dtype=jnp.bfloat16 to halve output HBM writeback if the
    consumer tolerates it.  Only the default module config is implemented.
    """
    assert task >= 0, "task < 0 branch not implemented"  # TODO(synk): see module header
    B, hh, ww, Cin = x.shape
    H = params["w1"].shape[1]
    Cout = params["wc"].shape[1]
    M = B * hh * ww
    out_dtype = jnp.dtype(out_dtype) if out_dtype is not None else x.dtype

    H_p = _round_up(H, _LANE)
    Cout_p = _round_up(Cout, _LANE)

    # Row tiling: keep >= 2 grid steps whenever M allows so both v7x TensorCores get
    # work (costs one ~0.35us grid step on single-TC v5e/v6e).  cdiv grid + masked
    # edge block, no host-side row padding.
    tm_cap = (_round_up(pl.cdiv(M, 2), _SUBLANE_BF16) if M >= 2 * _SUBLANE_BF16
              else _round_up(M, _SUBLANE_BF16))
    tm_eff = max(_SUBLANE_BF16, min(_round_up(tm, _SUBLANE_BF16), tm_cap))
    grid_m = pl.cdiv(M, tm_eff)

    f32 = jnp.float32
    # ---- tiny host-side weight algebra (fuses with the surrounding jit) ----
    # Fold U2->U3 (valid only because use_act=False, drop=0).
    w23 = params["w2"].astype(f32) @ params["w3"].astype(f32)
    b23 = params["b2"].astype(f32) @ params["w3"].astype(f32) + params["b3"]
    # Concatenate U1 | U23 so the first matmul presents N = 2*H_p.
    w13 = jnp.concatenate([_pad_2d(params["w1"], Cin, H_p),
                           _pad_2d(w23, Cin, H_p)], axis=1).astype(compute_dtype)
    b13 = jnp.concatenate([_pad_row(params["b1"], H_p),
                           _pad_row(b23, H_p)], axis=1).astype(f32)

    g1 = _pad_row(params["g1"], H_p).astype(f32)
    be1 = _pad_row(params["be1"], H_p).astype(f32)
    g3 = _pad_row(params["g3"], H_p).astype(f32)
    be3 = _pad_row(params["be3"], H_p).astype(f32)

    # Merged LoRA weight sum_{t<=task} B_t @ A_t, transposed to (Cin, Cout).  Branch
    # scalings pre-folded into the (tiny) weights / bias; zero padding is preserved
    # (scalar * 0 == 0), which the in-kernel LN/output padding math relies on.
    wl_t = jnp.einsum("tor,tri->io",
                      params["lora_b"][: task + 1], params["lora_a"][: task + 1])
    wc = (_pad_2d(params["wc"], H_p, Cout_p).astype(f32)
          * (1.0 - alpha_lora)).astype(compute_dtype)
    wl = (_pad_2d(wl_t, Cin, Cout_p).astype(f32) * alpha_lora).astype(compute_dtype)
    bout = _pad_row(params["bc"], Cout_p).astype(f32) * (1.0 - alpha_lora)

    x2 = x.reshape(M, Cin).astype(compute_dtype)   # feature dim left UNPADDED

    consts = (w13, b13, g1, be1, g3, be3, wc, wl, bout)

    kernel = functools.partial(_poly_mlp_kernel, hidden=H, hidden_p=H_p,
                               alpha=float(alpha), eps=float(eps))

    const_bytes = sum(int(c.size) * c.dtype.itemsize for c in consts)
    cd_bytes = jnp.dtype(compute_dtype).itemsize
    out_bytes = jnp.dtype(out_dtype).itemsize

    flops = 2 * M * (Cin * 2 * H_p + H_p * Cout_p + Cin * Cout_p)
    bytes_accessed = M * Cin * cd_bytes + const_bytes + M * Cout_p * out_bytes
    cost = pl.CostEstimate(flops=flops, transcendentals=2 * M,
                           bytes_accessed=bytes_accessed)

    # VMEM: double-buffered x/out tiles + (double-buffered) resident constants + f32
    # intermediates headroom.  Cap the request at 48 MiB (v7x has only 64 MiB physical).
    resident = (2 * tm_eff * Cin * cd_bytes
                + 2 * tm_eff * Cout_p * out_bytes
                + 2 * const_bytes
                + 12 * tm_eff * H_p * 4
                + 2 * tm_eff * Cout_p * 4)
    vmem_limit = int(min(48 * 2 ** 20, max(32 * 2 ** 20, 2 * resident)))

    grid_spec = pltpu.PrefetchScalarGridSpec(
        num_scalar_prefetch=0,
        grid=(grid_m,),
        # Weights/biases use a constant index_map -> stay resident across grid steps.
        in_specs=[pl.BlockSpec((tm_eff, Cin), lambda i: (i, 0))]
                 + [pl.BlockSpec(c.shape, lambda i: (0, 0)) for c in consts],
        out_specs=pl.BlockSpec((tm_eff, Cout_p), lambda i: (i, 0)),
    )
    out_p = pl.pallas_call(
        kernel,
        out_shape=jax.ShapeDtypeStruct((M, Cout_p), out_dtype),
        grid_spec=grid_spec,
        compiler_params=pltpu.CompilerParams(
            dimension_semantics=("parallel",),
            vmem_limit_bytes=vmem_limit),
        cost_estimate=cost,
    )(x2, *consts)

    return out_p[:, :Cout].reshape(B, hh, ww, Cout)


def _reference(x, p, task, alpha, alpha_lora, eps=1e-6):
    def ln(h, g, b):
        m = jnp.mean(h, axis=-1, keepdims=True)
        v = jnp.mean((h - m) ** 2, axis=-1, keepdims=True)
        return (h - m) / jnp.sqrt(v + eps) * g + b

    h1 = x @ p["w1"] + p["b1"]
    h3 = (x @ p["w2"] + p["b2"]) @ p["w3"] + p["b3"]
    n1 = ln(h1, p["g1"], p["be1"])
    n3 = ln(h3, p["g3"], p["be3"])
    z = n1 + alpha * (n1 * n3)
    out = z @ p["wc"] + p["bc"]
    wl_t = jnp.einsum("tor,tri->io", p["lora_b"][: task + 1], p["lora_a"][: task + 1])
    return (1.0 - alpha_lora) * out + alpha_lora * (x @ wl_t)


if __name__ == "__main__":
    key = jax.random.PRNGKey(0)
    ks = jax.random.split(key, 9)

    # Small shapes consistent with the module: x is (batch, h, w, channels).
    B, HH, WW, Cin = 2, 8, 8, 16
    H = 32                 # hidden_features
    H8 = H // 8            # 4
    Cout = Cin             # out_features defaults to in_features
    rank, n_tasks = 10, 4
    task = 2
    alpha = 1.0            # nn.Parameter(torch.ones(1))
    alpha_lora = 0.5       # construction arg (default 1 would zero out the C branch)

    x = jax.random.normal(ks[0], (B, HH, WW, Cin), jnp.float32)
    params = dict(
        w1=jax.random.normal(ks[1], (Cin, H), jnp.float32) * math.sqrt(2.0 / Cin),
        b1=jnp.ones((H,), jnp.float32),
        w2=jax.random.normal(ks[2], (Cin, H8), jnp.float32) * math.sqrt(2.0 / Cin),
        b2=jnp.ones((H8,), jnp.float32),
        w3=jax.random.normal(ks[3], (H8, H), jnp.float32) * math.sqrt(2.0 / H8),
        b3=jnp.ones((H,), jnp.float32),
        g1=jnp.ones((H,), jnp.float32), be1=jnp.zeros((H,), jnp.float32),
        g3=jnp.ones((H,), jnp.float32), be3=jnp.zeros((H,), jnp.float32),
        wc=jax.random.uniform(ks[4], (H, Cout), jnp.float32, -1.0, 1.0) / math.sqrt(H),
        bc=jax.random.uniform(ks[5], (Cout,), jnp.float32, -1.0, 1.0) / math.sqrt(H),
        lora_a=jax.random.uniform(ks[6], (n_tasks, rank, Cin), jnp.float32, -1.0, 1.0)
               / math.sqrt(Cin),
        lora_b=jax.random.uniform(ks[7], (n_tasks, Cout, rank), jnp.float32, -1.0, 1.0)
               / math.sqrt(rank),
    )

    y = poly_mlp_weighted_skiplora(x, params, task=task, alpha=alpha,
                                   alpha_lora=alpha_lora, tm=512)
    y = jax.block_until_ready(y)

    y_ref = _reference(x, params, task, alpha, alpha_lora)
    assert y.shape == (B, HH, WW, Cout)
    # bf16 operands with f32 MXU accumulation vs a pure-f32 reference.
    assert jnp.allclose(y, y_ref, atol=1e-1, rtol=1e-1), float(jnp.max(jnp.abs(y - y_ref)))

    print("KERNEL_OK")
</pallas_src>

<mosaic_0001>
module attributes {stable_mosaic.version = 11 : i64} {
  func.func @_poly_mlp_kernel(%arg0: i32, %arg1: memref<64x16xbf16, #tpu.memory_space<vmem>>, %arg2: memref<16x256xbf16, #tpu.memory_space<vmem>>, %arg3: memref<1x256xf32, #tpu.memory_space<vmem>>, %arg4: memref<1x128xf32, #tpu.memory_space<vmem>>, %arg5: memref<1x128xf32, #tpu.memory_space<vmem>>, %arg6: memref<1x128xf32, #tpu.memory_space<vmem>>, %arg7: memref<1x128xf32, #tpu.memory_space<vmem>>, %arg8: memref<128x128xbf16, #tpu.memory_space<vmem>>, %arg9: memref<16x128xbf16, #tpu.memory_space<vmem>>, %arg10: memref<1x128xf32, #tpu.memory_space<vmem>>, %arg11: memref<64x128xf32, #tpu.memory_space<vmem>>) attributes {dimension_semantics = [#tpu.dimension_semantics<parallel>], iteration_bounds = array<i64: 2>, scalar_prefetch = 0 : i64, scratch_operands = 0 : i64, tpu.core_type = #tpu.core_type<tc>, window_params = [{transform_indices = @transform_0, window_bounds = array<i64: 64, 16>}, {pipeline_mode = #tpu.pipeline_mode<synchronous>, transform_indices = @transform_1, window_bounds = array<i64: 16, 256>}, {pipeline_mode = #tpu.pipeline_mode<synchronous>, transform_indices = @transform_2, window_bounds = array<i64: 1, 256>}, {pipeline_mode = #tpu.pipeline_mode<synchronous>, transform_indices = @transform_3, window_bounds = array<i64: 1, 128>}, {pipeline_mode = #tpu.pipeline_mode<synchronous>, transform_indices = @transform_4, window_bounds = array<i64: 1, 128>}, {pipeline_mode = #tpu.pipeline_mode<synchronous>, transform_indices = @transform_5, window_bounds = array<i64: 1, 128>}, {pipeline_mode = #tpu.pipeline_mode<synchronous>, transform_indices = @transform_6, window_bounds = array<i64: 1, 128>}, {pipeline_mode = #tpu.pipeline_mode<synchronous>, transform_indices = @transform_7, window_bounds = array<i64: 128, 128>}, {pipeline_mode = #tpu.pipeline_mode<synchronous>, transform_indices = @transform_8, window_bounds = array<i64: 16, 128>}, {pipeline_mode = #tpu.pipeline_mode<synchronous>, transform_indices = @transform_9, window_bounds = array<i64: 1, 128>}, {transform_indices = @transform_10, window_bounds = array<i64: 64, 128>}]} {
    %c0 = arith.constant 0 : index
    %c0_0 = arith.constant 0 : index
    %0 = vector.load %arg1[%c0, %c0_0] : memref<64x16xbf16, #tpu.memory_space<vmem>>, vector<64x16xbf16>
    %c0_1 = arith.constant 0 : index
    %c0_2 = arith.constant 0 : index
    %1 = vector.load %arg2[%c0_1, %c0_2] : memref<16x256xbf16, #tpu.memory_space<vmem>>, vector<16x256xbf16>
    %cst = arith.constant dense<0.000000e+00> : vector<64x256xf32>
    %2 = tpu.matmul %0, %1, %cst {dimension_numbers = #tpu.dot_dimension_numbers<[1], [0], [0], [1], [0, 0, 1, 1], [], []>} : vector<64x16xbf16>, vector<16x256xbf16>, vector<64x256xf32> -> vector<64x256xf32>
    %c0_3 = arith.constant 0 : index
    %c0_4 = arith.constant 0 : index
    %3 = vector.load %arg3[%c0_3, %c0_4] : memref<1x256xf32, #tpu.memory_space<vmem>>, vector<1x256xf32>
    %4 = vector.broadcast %3 : vector<1x256xf32> to vector<64x256xf32>
    %5 = arith.addf %2, %4 : vector<64x256xf32>
    %6 = vector.extract_strided_slice %5 {offsets = [0, 0], sizes = [64, 128], strides = [1, 1]} : vector<64x256xf32> to vector<64x128xf32>
    %7 = vector.extract_strided_slice %5 {offsets = [0, 128], sizes = [64, 128], strides = [1, 1]} : vector<64x256xf32> to vector<64x128xf32>
    %c0_5 = arith.constant 0 : index
    %c0_6 = arith.constant 0 : index
    %8 = vector.load %arg4[%c0_5, %c0_6] : memref<1x128xf32, #tpu.memory_space<vmem>>, vector<1x128xf32>
    %c0_7 = arith.constant 0 : index
    %c0_8 = arith.constant 0 : index
    %9 = vector.load %arg5[%c0_7, %c0_8] : memref<1x128xf32, #tpu.memory_space<vmem>>, vector<1x128xf32>
    %cst_9 = arith.constant dense<0.000000e+00> : vector<64xf32>
    %10 = vector.multi_reduction <add>, %6, %cst_9 [1] : vector<64x128xf32> to vector<64xf32>
    %11 = vector.shape_cast %10 : vector<64xf32> to vector<64x1xf32>
    %cst_10 = arith.constant 3.125000e-02 : f32
    %12 = vector.broadcast %cst_10 : f32 to vector<64x1xf32>
    %13 = arith.mulf %11, %12 : vector<64x1xf32>
    %14 = vector.broadcast %13 : vector<64x1xf32> to vector<64x128xf32>
    %15 = arith.subf %6, %14 : vector<64x128xf32>
    %16 = arith.mulf %15, %15 : vector<64x128xf32>
    %cst_11 = arith.constant dense<0.000000e+00> : vector<64xf32>
    %17 = vector.multi_reduction <add>, %16, %cst_11 [1] : vector<64x128xf32> to vector<64xf32>
    %18 = vector.shape_cast %17 : vector<64xf32> to vector<64x1xf32>
    %19 = arith.mulf %13, %13 : vector<64x1xf32>
    %cst_12 = arith.constant 9.600000e+01 : f32
    %20 = vector.broadcast %cst_12 : f32 to vector<64x1xf32>
    %21 = arith.mulf %20, %19 : vector<64x1xf32>
    %22 = arith.subf %18, %21 : vector<64x1xf32>
    %cst_13 = arith.constant 3.125000e-02 : f32
    %23 = vector.broadcast %cst_13 : f32 to vector<64x1xf32>
    %24 = arith.mulf %22, %23 : vector<64x1xf32>
    %cst_14 = arith.constant 9.99999997E-7 : f32
    %25 = vector.broadcast %cst_14 : f32 to vector<64x1xf32>
    %26 = arith.addf %24, %25 : vector<64x1xf32>
    %27 = math.rsqrt %26 : vector<64x1xf32>
    %28 = vector.broadcast %27 : vector<64x1xf32> to vector<64x128xf32>
    %29 = arith.mulf %15, %28 : vector<64x128xf32>
    %30 = vector.broadcast %8 : vector<1x128xf32> to vector<64x128xf32>
    %31 = arith.mulf %29, %30 : vector<64x128xf32>
    %32 = vector.broadcast %9 : vector<1x128xf32> to vector<64x128xf32>
    %33 = arith.addf %31, %32 : vector<64x128xf32>
    %c0_15 = arith.constant 0 : index
    %c0_16 = arith.constant 0 : index
    %34 = vector.load %arg6[%c0_15, %c0_16] : memref<1x128xf32, #tpu.memory_space<vmem>>, vector<1x128xf32>
    %c0_17 = arith.constant 0 : index
    %c0_18 = arith.constant 0 : index
    %35 = vector.load %arg7[%c0_17, %c0_18] : memref<1x128xf32, #tpu.memory_space<vmem>>, vector<1x128xf32>
    %cst_19 = arith.constant dense<0.000000e+00> : vector<64xf32>
    %36 = vector.multi_reduction <add>, %7, %cst_19 [1] : vector<64x128xf32> to vector<64xf32>
    %37 = vector.shape_cast %36 : vector<64xf32> to vector<64x1xf32>
    %cst_20 = arith.constant 3.125000e-02 : f32
    %38 = vector.broadcast %cst_20 : f32 to vector<64x1xf32>
    %39 = arith.mulf %37, %38 : vector<64x1xf32>
    %40 = vector.broadcast %39 : vector<64x1xf32> to vector<64x128xf32>
    %41 = arith.subf %7, %40 : vector<64x128xf32>
    %42 = arith.mulf %41, %41 : vector<64x128xf32>
    %cst_21 = arith.constant dense<0.000000e+00> : vector<64xf32>
    %43 = vector.multi_reduction <add>, %42, %cst_21 [1] : vector<64x128xf32> to vector<64xf32>
    %44 = vector.shape_cast %43 : vector<64xf32> to vector<64x1xf32>
    %45 = arith.mulf %39, %39 : vector<64x1xf32>
    %cst_22 = arith.constant 9.600000e+01 : f32
    %46 = vector.broadcast %cst_22 : f32 to vector<64x1xf32>
    %47 = arith.mulf %46, %45 : vector<64x1xf32>
    %48 = arith.subf %44, %47 : vector<64x1xf32>
    %cst_23 = arith.constant 3.125000e-02 : f32
    %49 = vector.broadcast %cst_23 : f32 to vector<64x1xf32>
    %50 = arith.mulf %48, %49 : vector<64x1xf32>
    %cst_24 = arith.constant 9.99999997E-7 : f32
    %51 = vector.broadcast %cst_24 : f32 to vector<64x1xf32>
    %52 = arith.addf %50, %51 : vector<64x1xf32>
    %53 = math.rsqrt %52 : vector<64x1xf32>
    %54 = vector.broadcast %53 : vector<64x1xf32> to vector<64x128xf32>
    %55 = arith.mulf %41, %54 : vector<64x128xf32>
    %56 = vector.broadcast %34 : vector<1x128xf32> to vector<64x128xf32>
    %57 = arith.mulf %55, %56 : vector<64x128xf32>
    %58 = vector.broadcast %35 : vector<1x128xf32> to vector<64x128xf32>
    %59 = arith.addf %57, %58 : vector<64x128xf32>
    %60 = arith.mulf %33, %59 : vector<64x128xf32>
    %cst_25 = arith.constant 1.000000e+00 : f32
    %61 = vector.broadcast %cst_25 : f32 to vector<64x128xf32>
    %62 = arith.mulf %61, %60 : vector<64x128xf32>
    %63 = arith.addf %33, %62 : vector<64x128xf32>
    %64 = arith.truncf %63 : vector<64x128xf32> to vector<64x128xbf16>
    %c0_26 = arith.constant 0 : index
    %c0_27 = arith.constant 0 : index
    %65 = vector.load %arg8[%c0_26, %c0_27] : memref<128x128xbf16, #tpu.memory_space<vmem>>, vector<128x128xbf16>
    %cst_28 = arith.constant dense<0.000000e+00> : vector<64x128xf32>
    %66 = tpu.matmul %64, %65, %cst_28 {dimension_numbers = #tpu.dot_dimension_numbers<[1], [0], [0], [1], [0, 0, 1, 1], [], []>} : vector<64x128xbf16>, vector<128x128xbf16>, vector<64x128xf32> -> vector<64x128xf32>
    %c0_29 = arith.constant 0 : index
    %c0_30 = arith.constant 0 : index
    %67 = vector.load %arg9[%c0_29, %c0_30] : memref<16x128xbf16, #tpu.memory_space<vmem>>, vector<16x128xbf16>
    %cst_31 = arith.constant dense<0.000000e+00> : vector<64x128xf32>
    %68 = tpu.matmul %0, %67, %cst_31 {dimension_numbers = #tpu.dot_dimension_numbers<[1], [0], [0], [1], [0, 0, 1, 1], [], []>} : vector<64x16xbf16>, vector<16x128xbf16>, vector<64x128xf32> -> vector<64x128xf32>
    %69 = arith.addf %66, %68 : vector<64x128xf32>
    %c0_32 = arith.constant 0 : index
    %c0_33 = arith.constant 0 : index
    %70 = vector.load %arg10[%c0_32, %c0_33] : memref<1x128xf32, #tpu.memory_space<vmem>>, vector<1x128xf32>
    %71 = vector.broadcast %70 : vector<1x128xf32> to vector<64x128xf32>
    %72 = arith.addf %69, %71 : vector<64x128xf32>
    %c0_34 = arith.constant 0 : index
    %c0_35 = arith.constant 0 : index
    %73 = vector.load %arg11[%c0_34, %c0_35] : memref<64x128xf32, #tpu.memory_space<vmem>>, vector<64x128xf32>
    tpu.vector_store %arg11[%c0_34, %c0_35], %72 {strides = array<i32>} : memref<64x128xf32, #tpu.memory_space<vmem>>, vector<64x128xf32>,
    return
  }
  func.func @transform_0(%arg0: i32) -> (i32, i32) {
    %c0_i32 = arith.constant 0 : i32
    %c0_i32_0 = arith.constant 0 : i32
    return %arg0, %c0_i32 : i32, i32
  }
  func.func @transform_1(%arg0: i32) -> (i32, i32) {
    %c0_i32 = arith.constant 0 : i32
    %c0_i32_0 = arith.constant 0 : i32
    %c0_i32_1 = arith.constant 0 : i32
    return %c0_i32, %c0_i32_0 : i32, i32
  }
  func.func @transform_2(%arg0: i32) -> (i32, i32) {
    %c0_i32 = arith.constant 0 : i32
    %c0_i32_0 = arith.constant 0 : i32
    %c0_i32_1 = arith.constant 0 : i32
    return %c0_i32, %c0_i32_0 : i32, i32
  }
  func.func @transform_3(%arg0: i32) -> (i32, i32) {
    %c0_i32 = arith.constant 0 : i32
    %c0_i32_0 = arith.constant 0 : i32
    %c0_i32_1 = arith.constant 0 : i32
    return %c0_i32, %c0_i32_0 : i32, i32
  }
  func.func @transform_4(%arg0: i32) -> (i32, i32) {
    %c0_i32 = arith.constant 0 : i32
    %c0_i32_0 = arith.constant 0 : i32
    %c0_i32_1 = arith.constant 0 : i32
    return %c0_i32, %c0_i32_0 : i32, i32
  }
  func.func @transform_5(%arg0: i32) -> (i32, i32) {
    %c0_i32 = arith.constant 0 : i32
    %c0_i32_0 = arith.constant 0 : i32
    %c0_i32_1 = arith.constant 0 : i32
    return %c0_i32, %c0_i32_0 : i32, i32
  }
  func.func @transform_6(%arg0: i32) -> (i32, i32) {
    %c0_i32 = arith.constant 0 : i32
    %c0_i32_0 = arith.constant 0 : i32
    %c0_i32_1 = arith.constant 0 : i32
    return %c0_i32, %c0_i32_0 : i32, i32
  }
  func.func @transform_7(%arg0: i32) -> (i32, i32) {
    %c0_i32 = arith.constant 0 : i32
    %c0_i32_0 = arith.constant 0 : i32
    %c0_i32_1 = arith.constant 0 : i32
    return %c0_i32, %c0_i32_0 : i32, i32
  }
  func.func @transform_8(%arg0: i32) -> (i32, i32) {
    %c0_i32 = arith.constant 0 : i32
    %c0_i32_0 = arith.constant 0 : i32
    %c0_i32_1 = arith.constant 0 : i32
    return %c0_i32, %c0_i32_0 : i32, i32
  }
  func.func @transform_9(%arg0: i32) -> (i32, i32) {
    %c0_i32 = arith.constant 0 : i32
    %c0_i32_0 = arith.constant 0 : i32
    %c0_i32_1 = arith.constant 0 : i32
    return %c0_i32, %c0_i32_0 : i32, i32
  }
  func.func @transform_10(%arg0: i32) -> (i32, i32) {
    %c0_i32 = arith.constant 0 : i32
    %c0_i32_0 = arith.constant 0 : i32
    return %arg0, %c0_i32 : i32, i32
  }
}

</mosaic_0001>

<bundles_post_ra>
// kernel: poly_mlp_weighted_skiplora.1
= control target key start
LH: loop header
LB: loop body
LE: loop exit
PB: predicated region body
PF: predicated region fallthrough
CT: control target
= control target key end

     0   :  { %15 = vsyncpa [#allocation3], 0  ;;  %s2167_s0 = inlined_call_operand.vmem [shape: bf16[128,16], index: 0, kind: input, shape index: {}]   ;;  %s2168_s1 = inlined_call_operand.vmem [shape: bf16[16,256], index: 1, kind: input, shape index: {}]   ;;  %s2169_s2 = inlined_call_operand.vmem [shape: f32[1,256], index: 2, kind: input, shape index: {}]   ;;  %s2170_s3 = inlined_call_operand.vmem [shape: f32[1,128], index: 3, kind: input, shape index: {}]   ;;  %s2171_s4 = inlined_call_operand.vmem [shape: f32[1,128], index: 4, kind: input, shape index: {}]   ;;  %s2172_s5 = inlined_call_operand.vmem [shape: f32[1,128], index: 5, kind: input, shape index: {}]   ;;  %s2173_s6 = inlined_call_operand.vmem [shape: f32[1,128], index: 6, kind: input, shape index: {}]   ;;  %s2174_s7 = inlined_call_operand.vmem [shape: bf16[128,128], index: 7, kind: input, shape index: {}]   ;;  %s2175_s8 = inlined_call_operand.vmem [shape: bf16[16,128], index: 8, kind: input, shape index: {}]   ;;  %s2176_s9 = inlined_call_operand.vmem [shape: f32[1,128], index: 9, kind: input, shape index: {}]   ;;  %s2177_s10 = inlined_call_operand.hbm [shape: f32[128,128], index: 10, kind: output, shape index: {}]  }
   0x1   :  { %17 = vsyncpa [#allocation3 + $0x1], 0  ;;  %s1450_s13 = smov 0   ;;  %s1452_s14 = smov 0  }
   0x2   :  { %s1454_s15 = smov 0   ;;  %s1456_s16 = smov 0  }
   0x3 LB: > { %s1471_s17 = sadd.s32 4294967295, %s1391_s16   ;;  %s1143_s18 = sadd.s32 4294967294, %s1391_s16   ;;  %s1391_s16 = sphi %s1456_s16, %s2205_s16   ;;  %s1387_s15 = sphi %s1454_s15, %s2204_s15   ;;  %s1383_s14 = sphi %s1452_s14, %s2203_s14   ;;  %s1379_s13 = sphi %s1450_s13, %s2202_s13  }
   0x4   : > { %s1475_s19 = sadd.s32 1, %s1391_s16   ;;  %s245_s20 = sadd.s32 1, %s1387_s15 }
   0x5   : > { %s242_s21 = ssub.s32 %s1391_s16, %s1475_s19  ;;  %p255_p0 = scmp.ne.s32.totalorder %s1387_s15, %s1383_s14 }
   0x6   : > { %p243_p1 = scmp.eq.s32.totalorder %s242_s21, 0  ;;  %p256_p2 = scmp.eq.s32.totalorder %s1471_s17, 1 }
   0x7   : > { %p261_p3 = scmp.ne.s32.totalorder %s1383_s14, %s1379_s13  ;;  %p262_p4 = scmp.eq.s32.totalorder %s1143_s18, 1 }
   0x8   : > { %s1486_s22 = scalar_select %p243_p1, %s1387_s15, %s245_s20  }
   0x9   : > { %p1488_p5 = por %p256_p2, %p255_p0  ;;  %p1492_p6 = por %p262_p4, %p261_p3 }
   0xa   : > { %p1146_p7 = scmp.ge.s32.totalorder %s1391_s16, 1  ;;  %p316_p8 = scmp.lt.s32.totalorder %s1391_s16, 3 }
   0xc   : > { %p317_p9 = pnand %p1146_p7, %p316_p8 }
   0xd   : > { %s1148_s18 = sshll.u32 (!%p317_p9), %s1471_s17, 3  ;;  %s1242_s27 = sshll.u32 (!%p317_p9), %s1471_s17, 6 }
   0xe   : > { %320 = sbr.rel (%p317_p9) target bundleno = 642 (0x282), region = 60  ;;  %p355_p10 = scmp.lt.s32.totalorder (!%p317_p9), %s1148_s18, 15 }
   0xf   : > { %s1077_s30 = scalar_lea.hbm (!%p317_p9), %s2177_s10, %s1242_s27  ;;  %s1349_s28 = scalar_lea.hbm (!%p317_p9), %s2177_s10, 128 }
  0x10   : > { %s1080_s12 = sshll.u32 (!%p317_p9), %s1077_s30, 4  ;;  %s1081_s12 = int_to_ptr.hbm [resolvable:$true] %s1080_s12 }
  0x13   : > { %v1168_v0 = vld [vmem:[%s2168_s1] sm:$0xf]  ;;  %v1232_v1 = vld [vmem:[%s2168_s1 + $0x4] sm:$0xf0]  ;;  %v1231_v2 = vld [vmem:[%s2168_s1 + $0x4] sm:$0xf] }
  0x14   : > { %v1169_v3 = vor.u32 %v1232_v1, %v1168_v0  ;;  %v1170_v4 = vld [vmem:[%s2168_s1 + $0x8] sm:$0xf0]  ;;  %s2207_s18 = smov (!%p355_p10, %s1148_s18), 15  ;;  %vm408_vm0 = vcmask 130048   ;;  %v372_v14 = vld [vmem:[%s2169_s2] sm:$0x3] }
  0x15   : > { %v1173_v5 = vor.u32 %v1231_v2, %v1170_v4  ;;  %s1149_s20 = sshll.u32 %s2207_s18, 2  ;;  %v374_v15 = vperm.slane %v372_v14, 0  ;;  %v375_v16 = vperm.slane %v372_v14, 1  ;;  %s351_s18 = sand.u32 1, %s1383_s14  }
  0x16   : > { %428 = vmatpush.bf16.msra.mxu0 %v1169_v3  ;;  %s358_s26 = scalar_lea.vmem %s2167_s0, %s1149_s20  ;;  %s1147_s20 = sshll.u32 %s351_s18, 6 }
  0x17   : > { %457 = vmatpush.bf16.msra.mxu1 %v1173_v5  ;;  %v1514_v6 = vld [vmem:[%s358_s26] sm:$0xff]  ;;  %v1520_v7 = vld [vmem:[%s358_s26 + $0x8] sm:$0xff]  ;;  %v1526_v8 = vld [vmem:[%s358_s26 + $0x10] sm:$0xff]  ;;  %s1066_s17 = scalar_lea.sflag [#allocation3], %s351_s18 }
  0x18   : > { %v1532_v9 = vld [vmem:[%s358_s26 + $0x18] sm:$0xff]  ;;  %s2123_s26 = scalar_lea.vmem [#allocation2], %s1147_s20  ;;  %s1343_s20 = sshra.s32 %s1081_s12, 4  ;;  %s1344_s20 = int_to_ptr.hbm [resolvable:$true] %s1343_s20 }
  0x19   : > { %1174 = vmatmul.msk.bf16.vlgmr.msra.gmra.mxu0 %vm408_vm0, %v1514_v6  ;;  %s1078_s11 = sshll.u32 %s2123_s26, 4  ;;  %s1345_s21 = scalar_lea.hbm %s1344_s20, 64  ;;  %s1079_s11 = int_to_ptr.vmem [resolvable:$true] %s1078_s11 }
  0x1a   : > { %1178 = vmatmul.msk.bf16.vlgmr.msra.gmra.mxu1 %vm408_vm0, %v1514_v6  ;;  %p1346_p11 = scmp.ne.s32.totalorder %s1344_s20, %s1345_s21  ;;  %p1350_p0 = scmp.lt.s32.totalorder %s1344_s20, %s2177_s10 }
  0x1b   : > { %p1351_p1 = scmp.lt.s32.totalorder %s1349_s28, %s1345_s21 }
  0x1c   : > { %p1347_p12 = pnand %p1346_p11, %p1488_p5 }
  0x1d   : > { %p1352_p2 = por %p1351_p1, %p1350_p0 }
  0x1e   : > { %p1348_p13 = pneg %p1347_p12 }
  0x20   : > { %p1353_p3 = pnand %p1352_p2, %p1348_p13 }
  0x29   : > { %1175 = vmatmul.msk.bf16.gmra.mxu0 %vm408_vm0, %v1520_v7 }
  0x2a   : > { %1179 = vmatmul.msk.bf16.gmra.mxu1 %vm408_vm0, %v1520_v7 }
  0x39   : > { %1176 = vmatmul.msk.bf16.gmra.mxu0 %vm408_vm0, %v1526_v8 }
  0x3a   : > { %1180 = vmatmul.msk.bf16.gmra.mxu1 %vm408_vm0, %v1526_v8 }
  0x49   : > { %1177 = vmatmul.msk.bf16.gmra.mxu0 %vm408_vm0, %v1532_v9 }
  0x4a   : > { %1181 = vmatmul.msk.bf16.gmra.mxu1 %vm408_vm0, %v1532_v9 }
  0x96   : > { %v430_v10 = vpop.f32.mrf.mxu0 }
  0x97   : > { %v459_v11 = vpop.f32.mrf.mxu1  ;;  %v431_v33 = vadd.f32 %v430_v10, %v374_v15 }
  0x98   : > { %v1556_v43 = vadd.f32 %v459_v11, %v375_v16 }
  0x9e   : > { %v432_v12 = vpop.f32.mrf.mxu0 }
  0x9f   : > { %v461_v13 = vpop.f32.mrf.mxu1  ;;  %v1541_v36 = vadd.f32 %v432_v12, %v374_v15 }
  0xa0   : > { %v1558_v44 = vadd.f32 %v461_v13, %v375_v16 }
  0xa6   : > { %v435_v17 = vpop.f32.mrf.mxu0 }
  0xa7   : > { %v464_v18 = vpop.f32.mrf.mxu1  ;;  %v436_v19 = vadd.f32 %v435_v17, %v374_v15 }
  0xa8   : > { %v465_v20 = vadd.f32 %v464_v18, %v375_v16 }
  0xa9   : > { %485 = vadd.xlane.f32.xlu0 %v436_v19 }
  0xaa   : > { %693 = vadd.xlane.f32.xlu1 %v465_v20 }
  0xae   : > { %v437_v21 = vpop.f32.mrf.mxu0 }
  0xaf   : > { %v466_v22 = vpop.f32.mrf.mxu1  ;;  %v438_v23 = vadd.f32 %v437_v21, %v374_v15 }
  0xb0   : > { %v467_v24 = vadd.f32 %v466_v22, %v375_v16 }
  0xb1   : > { %487 = vadd.xlane.f32.xlu0 %v438_v23 }
  0xb2   : > { %695 = vadd.xlane.f32.xlu1 %v467_v24 }
  0xb6   : > { %v440_v25 = vpop.f32.mrf.mxu0 }
  0xb7   : > { %v469_v26 = vpop.f32.mrf.mxu1  ;;  %v441_v27 = vadd.f32 %v440_v25, %v374_v15 }
  0xb8   : > { %v470_v28 = vadd.f32 %v469_v26, %v375_v16 }
  0xb9   : > { %489 = vadd.xlane.f32.xlu2 %v441_v27 }
  0xba   : > { %697 = vadd.xlane.f32.xlu0 %v470_v28 }
  0xbe   : > { %v442_v29 = vpop.f32.mrf.mxu0 }
  0xbf   : > { %v471_v30 = vpop.f32.mrf.mxu1  ;;  %v443_v31 = vadd.f32 %v442_v29, %v374_v15 }
  0xc0   : > { %v472_v32 = vadd.f32 %v471_v30, %v375_v16 }
  0xc1   : > { %491 = vadd.xlane.f32.xlu2 %v443_v31 }
  0xc2   : > { %699 = vadd.xlane.f32.xlu1 %v472_v32  ;;  %481 = vadd.xlane.f32.xlu0 %v431_v33 }
  0xc6   : > { %v445_v34 = vpop.f32.mrf.mxu0 }
  0xc7   : > { %v474_v35 = vpop.f32.mrf.mxu1  ;;  %v1543_v37 = vadd.f32 %v445_v34, %v374_v15 }
  0xc8   : > { %v1547_v40 = vadd.f32 %v474_v35, %v375_v16 }
  0xc9   : > { %493 = vadd.xlane.f32.xlu2 %v1543_v37 }
  0xca   : > { %483 = vadd.xlane.f32.xlu1 %v1541_v36 }
  0xce   : > { %v447_v38 = vpop.f32.mrf.mxu0 }
  0xcf   : > { %v476_v39 = vpop.f32.mrf.mxu1  ;;  %v1549_v41 = vadd.f32 %v447_v38, %v374_v15 }
  0xd0   : > { %v1551_v42 = vadd.f32 %v476_v39, %v375_v16 }
  0xd1   : > { %495 = vadd.xlane.f32.xlu0 %v1549_v41 }
  0xd2   : > { %703 = vadd.xlane.f32.xlu2 %v1551_v42  ;;  %701 = vadd.xlane.f32.xlu1 %v1547_v40 }
  0xd9   : > { %691 = vadd.xlane.f32.xlu0 %v1558_v44 }
  0xda   : > { %689 = vadd.xlane.f32.xlu2 %v1556_v43 }
 0x11c   : > { %v486_v46 = vpop.xlane.xlu0 %485 }
 0x11d   : > { %v694_v45 = vpop.xlane.xlu1 %693  ;;  %v1564_v48 = vmul.f32 0.03125, %v486_v46 }
 0x11e   : > { %v1562_v47 = vmul.f32 0.03125, %v694_v45 }
 0x11f   : > { %v1570_v50 = vsub.f32 %v436_v19, %v1564_v48 }
 0x120   : > { %v1567_v49 = vsub.f32 %v465_v20, %v1562_v47 }
 0x121   : > { %v515_v51 = vmul.f32 %v1570_v50, %v1570_v50 }
 0x122   : > { %v723_v52 = vmul.f32 %v1567_v49, %v1567_v49 }
 0x123   : > { %525 = vadd.xlane.f32.xlu1 %v515_v51 }
 0x124   : > { %733 = vadd.xlane.f32.xlu0 %v723_v52  ;;  %v488_v54 = vpop.xlane.xlu0 %487 }
 0x125   : > { %v696_v53 = vpop.xlane.xlu1 %695  ;;  %v1578_v56 = vmul.f32 0.03125, %v488_v54 }
 0x126   : > { %v1576_v55 = vmul.f32 0.03125, %v696_v53 }
 0x127   : > { %v1584_v58 = vsub.f32 %v438_v23, %v1578_v56 }
 0x128   : > { %v1581_v57 = vsub.f32 %v467_v24, %v1576_v55 }
 0x129   : > { %v516_v59 = vmul.f32 %v1584_v58, %v1584_v58 }
 0x12a   : > { %v724_v60 = vmul.f32 %v1581_v57, %v1581_v57 }
 0x12b   : > { %527 = vadd.xlane.f32.xlu2 %v516_v59  ;;  %v1241_v59 = vld [vmem:[%s2175_s8] sm:$0xff] }
 0x12c   : > { %735 = vadd.xlane.f32.xlu1 %v724_v60  ;;  %v490_v61 = vpop.xlane.xlu2 %489  ;;  %946 = vmatpush.bf16.msra.mxu2 %v1241_v59  ;;  %v1238_v60 = vld [vmem:[%s2174_s7 + $0x28] sm:$0xff] }
 0x12d   : > { %v698_v62 = vpop.xlane.xlu0 %697  ;;  %v1590_v63 = vmul.f32 0.03125, %v490_v61  ;;  %v747_v61 = vmul.f32 %v1562_v47, %v1562_v47  ;;  %v748_v47 = vmul.f32 %v1576_v55, %v1576_v55 }
 0x12e   : > { %v1592_v0 = vmul.f32 0.03125, %v698_v62  ;;  %v539_v62 = vmul.f32 %v1564_v48, %v1564_v48  ;;  %v540_v48 = vmul.f32 %v1578_v56, %v1578_v56 }
 0x12f   : > { %v1595_v1 = vsub.f32 %v441_v27, %v1590_v63  ;;  %1186 = vmatmul.msk.bf16.vlgmr.msra.gmra.mxu2 %vm408_vm0, %v1514_v6  ;;  %v1236_v6 = vld [vmem:[%s2174_s7 + $0x18] sm:$0xff] }
 0x130   : > { %v1598_v2 = vsub.f32 %v470_v28, %v1592_v0 }
 0x131   : > { %v517_v3 = vmul.f32 %v1595_v1, %v1595_v1 }
 0x132   : > { %v725_v4 = vmul.f32 %v1598_v2, %v1598_v2 }
 0x133   : > { %529 = vadd.xlane.f32.xlu2 %v517_v3  ;;  %v1237_v3 = vld [vmem:[%s2174_s7 + $0x20] sm:$0xff] }
 0x134   : > { %737 = vadd.xlane.f32.xlu1 %v725_v4  ;;  %v492_v10 = vpop.xlane.xlu2 %491  ;;  %v547_v4 = vmul.f32 96.0, %v539_v62 }
 0x135   : > { %v700_v5 = vpop.xlane.xlu1 %699  ;;  %v1606_v12 = vmul.f32 0.03125, %v492_v10  ;;  %v482_v13 = vpop.xlane.xlu0 %481 }
 0x136   : > { %v1604_v11 = vmul.f32 0.03125, %v700_v5  ;;  %v1608_v14 = vmul.f32 0.03125, %v482_v13  ;;  %v755_v5 = vmul.f32 96.0, %v747_v61 }
 0x137   : > { %v1614_v16 = vsub.f32 %v443_v31, %v1606_v12 }
 0x138   : > { %v1611_v15 = vsub.f32 %v472_v32, %v1604_v11  ;;  %v1617_v17 = vsub.f32 %v431_v33, %v1608_v14 }
 0x139   : > { %v518_v19 = vmul.f32 %v1614_v16, %v1614_v16 }
 0x13a   : > { %v726_v18 = vmul.f32 %v1611_v15, %v1611_v15  ;;  %v513_v20 = vmul.f32 %v1617_v17, %v1617_v17 }
 0x13b   : > { %531 = vadd.xlane.f32.xlu0 %v518_v19 }
 0x13c   : > { %739 = vadd.xlane.f32.xlu2 %v726_v18  ;;  %521 = vadd.xlane.f32.xlu1 %v513_v20  ;;  %v494_v21 = vpop.xlane.xlu2 %493 }
 0x13d   : > { %v484_v22 = vpop.xlane.xlu1 %483  ;;  %v1625_v23 = vmul.f32 0.03125, %v494_v21 }
 0x13e   : > { %v1651_v35 = vmul.f32 0.03125, %v484_v22  ;;  %v1235_v22 = vld [vmem:[%s2174_s7 + $0x10] sm:$0xff] }
 0x13f   : > { %v1629_v24 = vsub.f32 %v1543_v37, %v1625_v23  ;;  %1187 = vmatmul.msk.bf16.gmra.mxu2 %vm408_vm0, %v1520_v7 }
 0x141   : > { %v519_v25 = vmul.f32 %v1629_v24, %v1629_v24 }
 0x143   : > { %533 = vadd.xlane.f32.xlu0 %v519_v25 }
 0x144   : > { %v496_v30 = vpop.xlane.xlu0 %495 }
 0x145   : > { %v704_v26 = vpop.xlane.xlu2 %703  ;;  %v702_v27 = vpop.xlane.xlu1 %701  ;;  %v1637_v31 = vmul.f32 0.03125, %v496_v30  ;;  %v756_v30 = vmul.f32 96.0, %v748_v47 }
 0x146   : > { %v1633_v28 = vmul.f32 0.03125, %v704_v26  ;;  %v1635_v29 = vmul.f32 0.03125, %v702_v27  ;;  %v548_v27 = vmul.f32 96.0, %v540_v48 }
 0x147   : > { %v1649_v34 = vsub.f32 %v1549_v41, %v1637_v31 }
 0x148   : > { %v1641_v32 = vsub.f32 %v1551_v42, %v1633_v28  ;;  %v1645_v33 = vsub.f32 %v1547_v40, %v1635_v29  ;;  %v1661_v42 = vsub.f32 %v1541_v36, %v1651_v35 }
 0x149   : > { %v520_v39 = vmul.f32 %v1649_v34, %v1649_v34 }
 0x14a   : > { %v727_v37 = vmul.f32 %v1645_v33, %v1645_v33  ;;  %v728_v38 = vmul.f32 %v1641_v32, %v1641_v32  ;;  %v514_v53 = vmul.f32 %v1661_v42, %v1661_v42 }
 0x14b   : > { %535 = vadd.xlane.f32.xlu1 %v520_v39 }
 0x14c   : > { %741 = vadd.xlane.f32.xlu2 %v727_v37  ;;  %743 = vadd.xlane.f32.xlu0 %v728_v38  ;;  %v692_v45 = vpop.xlane.xlu0 %691  ;;  %v1234_v37 = vld [vmem:[%s2174_s7 + $0x8] sm:$0xff] }
 0x14d   : > { %v690_v40 = vpop.xlane.xlu2 %689  ;;  %v1665_v46 = vmul.f32 0.03125, %v692_v45  ;;  %v749_v45 = vmul.f32 %v1592_v0, %v1592_v0  ;;  %v750_v0 = vmul.f32 %v1604_v11, %v1604_v11  ;;  %v543_v11 = vmul.f32 %v1625_v23, %v1625_v23 }
 0x14e   : > { %v1663_v41 = vmul.f32 0.03125, %v690_v40  ;;  %v541_v40 = vmul.f32 %v1590_v63, %v1590_v63 }
 0x14f   : > { %v1673_v52 = vsub.f32 %v1558_v44, %v1665_v46  ;;  %v1239_v44 = vld [vmem:[%s2174_s7 + $0x30] sm:$0xff]  ;;  %v757_v62 = vmul.f32 96.0, %v749_v45  ;;  %v1776_v45 = vmul.f32 %v1637_v31, %v1637_v31  ;;  %1188 = vmatmul.msk.bf16.gmra.mxu2 %vm408_vm0, %v1526_v8 }
 0x150   : > { %v1669_v51 = vsub.f32 %v1556_v43, %v1663_v41  ;;  %v1240_v43 = vld [vmem:[%s2174_s7 + $0x38] sm:$0xff] }
 0x151   : > { %v722_v54 = vmul.f32 %v1673_v52, %v1673_v52  ;;  %1243 = vmatpush.bf16.msra.mxu3 %v1240_v43  ;;  %1016 = vmatpush.bf16.msrb.mxu0 %v1240_v43 }
 0x152   : > { %v721_v36 = vmul.f32 %v1669_v51, %v1669_v51 }
 0x153   : > { %731 = vadd.xlane.f32.xlu1 %v722_v54  ;;  %v1233_v54 = vld [vmem:[%s2174_s7] sm:$0xff] }
 0x154   : > { %523 = vadd.xlane.f32.xlu2 %v514_v53  ;;  %729 = vadd.xlane.f32.xlu0 %v721_v36 }
 0x155   : > { %1244 = vmatpush.bf16.msra.mxu3 %v1239_v44  ;;  %1017 = vmatpush.bf16.msrb.mxu0 %v1239_v44 }
 0x159   : > { %1245 = vmatpush.bf16.msra.mxu3 %v1238_v60  ;;  %1018 = vmatpush.bf16.msrb.mxu0 %v1238_v60  ;;  %v549_v60 = vmul.f32 96.0, %v541_v40  ;;  %v1770_v40 = vmul.f32 %v1633_v28, %v1633_v28 }
 0x15d   : > { %1246 = vmatpush.bf16.msra.mxu3 %v1237_v3  ;;  %1019 = vmatpush.bf16.msrb.mxu0 %v1237_v3  ;;  %v542_v3 = vmul.f32 %v1606_v12, %v1606_v12 }
 0x15f   : > { %1189 = vmatmul.msk.bf16.gmra.mxu2 %vm408_vm0, %v1532_v9 }
 0x161   : > { %1247 = vmatpush.bf16.msra.mxu3 %v1236_v6  ;;  %1020 = vmatpush.bf16.msrb.mxu0 %v1236_v6 }
 0x165   : > { %1248 = vmatpush.bf16.msra.mxu3 %v1235_v22  ;;  %1021 = vmatpush.bf16.msrb.mxu0 %v1235_v22 }
 0x169   : > { %1249 = vmatpush.bf16.msra.mxu3 %v1234_v37  ;;  %1022 = vmatpush.bf16.msrb.mxu0 %v1234_v37 }
 0x16d   : > { %1250 = vmatpush.bf16.msra.mxu3 %v1233_v54  ;;  %1023 = vmatpush.bf16.msrb.mxu0 %v1233_v54 }
 0x196   : > { %v526_v10 = vpop.xlane.xlu1 %525 }
 0x197   : > { %v734_v13 = vpop.xlane.xlu0 %733  ;;  %v555_v18 = vsub.f32 %v526_v10, %v547_v4  ;;  %v537_v4 = vmul.f32 %v1608_v14, %v1608_v14  ;;  %v1756_v14 = vmul.f32 %v1651_v35, %v1651_v35  ;;  %v751_v35 = vmul.f32 %v1635_v29, %v1635_v29 }
 0x198   : > { %v763_v19 = vsub.f32 %v734_v13, %v755_v5 }
 0x199   : > { %v563_v20 = vmul.f32 0.03125, %v555_v18 }
 0x19a   : > { %v771_v21 = vmul.f32 0.03125, %v763_v19 }
 0x19b   : > { %v1712_v25 = vadd.f32 1e-06, %v563_v20 }
 0x19c   : > { %v1714_v26 = vadd.f32 1e-06, %v771_v21  ;;  %v758_v21 = vmul.f32 96.0, %v750_v0 }
 0x19d   : > { %1297 = vrsqrt.f32 %v1712_v25  ;;  %vm603_vm1 = vweird.f32 %v1712_v25 }
 0x19e   : > { %1299 = vrsqrt.f32 %v1714_v26  ;;  %v528_v55 = vpop.xlane.xlu2 %527  ;;  %vm811_vm4 = vweird.f32 %v1714_v26 }
 0x19f   : > { %v736_v56 = vpop.xlane.xlu1 %735  ;;  %v556_v38 = vsub.f32 %v528_v55, %v548_v27  ;;  %v545_v27 = vmul.f32 96.0, %v537_v4 }
 0x1a0   : > { %v764_v39 = vsub.f32 %v736_v56, %v756_v30  ;;  %v550_v30 = vmul.f32 96.0, %v542_v3 }
 0x1a1   : > { %v564_v53 = vmul.f32 0.03125, %v556_v38  ;;  %v1764_v38 = vmul.f32 96.0, %v543_v11 }
 0x1a2   : > { %v772_v36 = vmul.f32 0.03125, %v764_v39 }
 0x1a3   : > { %v1730_v43 = vpop.eup %1297  ;;  %v1732_v44 = vadd.f32 1e-06, %v564_v53 }
 0x1a4   : > { %v1734_v59 = vadd.f32 1e-06, %v772_v36  ;;  %v1736_v7 = vpop.eup %1299  ;;  %v598_v63 = vmul.f32 %v1730_v43, %v1712_v25  ;;  %v1782_v36 = vmul.f32 %v1663_v41, %v1663_v41  ;;  %vm604_vm2 = vweird.f32 %v1730_v43 }
 0x1a5   : > { %v806_v61 = vmul.f32 %v1736_v7, %v1714_v26  ;;  %1301 = vrsqrt.f32 %v1732_v44  ;;  %vm812_vm3 = vweird.f32 %v1736_v7  ;;  %vm1802_vm5 = vmor %vm603_vm1, %vm604_vm2  ;;  %vm613_vm6 = vweird.f32 %v1732_v44 }
 0x1a6   : > { %v599_v5 = vmul.f32 %v1730_v43, %v598_v63  ;;  %1303 = vrsqrt.f32 %v1734_v59  ;;  %v530_v10 = vpop.xlane.xlu2 %529  ;;  %vm1813_vm8 = vmor %vm811_vm4, %vm812_vm3  ;;  %vm821_vm10 = vweird.f32 %v1734_v59 }
 0x1a7   : > { %v738_v13 = vpop.xlane.xlu1 %737  ;;  %v807_v6 = vmul.f32 %v1736_v7, %v806_v61  ;;  %v557_v18 = vsub.f32 %v530_v10, %v549_v60 }
 0x1a8   : > { %v765_v19 = vsub.f32 %v738_v13, %v757_v62  ;;  %v600_v47 = vmul.f32 0.5, %v599_v5 }
 0x1a9   : > { %v808_v48 = vmul.f32 0.5, %v807_v6  ;;  %v565_v20 = vmul.f32 0.03125, %v557_v18 }
 0x1aa   : > { %v773_v12 = vmul.f32 0.03125, %v765_v19  ;;  %v601_v22 = vsub.f32 1.5, %v600_v47 }
 0x1ab   : > { %v1758_v55 = vpop.eup %1301  ;;  %v809_v56 = vsub.f32 1.5, %v808_v48  ;;  %v1760_v23 = vadd.f32 1e-06, %v565_v20 }
 0x1ac   : > { %v1762_v37 = vadd.f32 1e-06, %v773_v12  ;;  %v1766_v39 = vpop.eup %1303  ;;  %v608_v53 = vmul.f32 %v1758_v55, %v1732_v44  ;;  %v602_v29 = vmul.f32 %v1730_v43, %v601_v22  ;;  %vm614_vm7 = vweird.f32 %v1758_v55 }
 0x1ad   : > { %v816_v28 = vmul.f32 %v1766_v39, %v1734_v59  ;;  %1305 = vrsqrt.f32 %v1760_v23  ;;  %v810_v41 = vmul.f32 %v1736_v7, %v809_v56  ;;  %vm822_vm9 = vweird.f32 %v1766_v39  ;;  %vm1837_vm11 = vmor %vm613_vm6, %vm614_vm7 }
 0x1ae   : > { %v609_v31 = vmul.f32 %v1758_v55, %v608_v53  ;;  %1307 = vrsqrt.f32 %v1762_v37  ;;  %v532_v63 = vpop.xlane.xlu0 %531  ;;  %v606_v8 = vsel %vm1802_vm5, %v1730_v43, %v602_v29  ;;  %v746_v44 = vmul.f32 %v1665_v46, %v1665_v46  ;;  %vm1859_vm12 = vmor %vm821_vm10, %vm822_vm9  ;;  %v1867_v29 = vld [vmem:[%s2172_s5] ss:$0 sm:$0xff] }
 0x1af   : > { %v740_v54 = vpop.xlane.xlu2 %739  ;;  %v817_v60 = vmul.f32 %v1766_v39, %v816_v28  ;;  %v522_v61 = vpop.xlane.xlu1 %521  ;;  %v558_v4 = vsub.f32 %v532_v63, %v550_v30  ;;  %v814_v18 = vsel %vm1813_vm8, %v1736_v7, %v810_v41  ;;  %v659_v59 = vmul.f32 %v606_v8, %v1570_v50  ;;  %v1849_v30 = vld [vmem:[%s2170_s3] ss:$0 sm:$0xff] }
 0x1b0   : > { %v766_v0 = vsub.f32 %v740_v54, %v758_v21  ;;  %v610_v62 = vmul.f32 0.5, %v609_v31  ;;  %v553_v3 = vsub.f32 %v522_v61, %v545_v27  ;;  %v867_v56 = vmul.f32 %v814_v18, %v1567_v49 }
 0x1b1   : > { %v818_v10 = vmul.f32 0.5, %v817_v60  ;;  %v566_v43 = vmul.f32 0.03125, %v558_v4  ;;  %v759_v63 = vmul.f32 96.0, %v751_v35  ;;  %v1879_v60 = vmul.f32 96.0, %v1756_v14 }
 0x1b2   : > { %v774_v13 = vmul.f32 0.03125, %v766_v0  ;;  %v611_v25 = vsub.f32 1.5, %v610_v62  ;;  %v561_v11 = vmul.f32 0.03125, %v553_v3  ;;  %v760_v61 = vmul.f32 96.0, %v1770_v40  ;;  %v1887_v62 = vld [vmem:[%s2171_s4] ss:$0 sm:$0xff] }
 0x1b3   : > { %v1818_v6 = vpop.eup %1305  ;;  %v819_v19 = vsub.f32 1.5, %v818_v10  ;;  %v1874_v31 = vadd.f32 1e-06, %v566_v43  ;;  %v878_v14 = vmul.f32 %v1867_v29, %v867_v56  ;;  %v1895_v3 = vld [vmem:[%s2173_s6] ss:$0 sm:$0xff]  ;;  %vm831_vm13 = vweird.f32 %v1762_v37 }
 0x1b4   : > { %v1823_v47 = vadd.f32 1e-06, %v774_v13  ;;  %v1825_v48 = vpop.eup %1307  ;;  %v612_v20 = vmul.f32 %v1758_v55, %v611_v25  ;;  %v618_v12 = vmul.f32 %v1818_v6, %v1760_v23  ;;  %v1831_v21 = vadd.f32 1e-06, %v561_v11 }
 0x1b5   : > { %v820_v22 = vmul.f32 %v1766_v39, %v819_v19  ;;  %v826_v27 = vmul.f32 %v1825_v48, %v1762_v37  ;;  %v1900_v5 = vmul.f32 96.0, %v746_v44  ;;  %v1903_v10 = vmul.f32 96.0, %v1782_v36 }
 0x1b6   : > { %1309 = vrsqrt.f32 %v1823_v47  ;;  %v616_v53 = vsel %vm1837_vm11, %v1758_v55, %v612_v20  ;;  %v534_v50 = vpop.xlane.xlu0 %533  ;;  %v619_v46 = vmul.f32 %v1818_v6, %v618_v12  ;;  %vm623_vm14 = vweird.f32 %v1760_v23 }
 0x1b7   : > { %1311 = vrsqrt.f32 %v1831_v21  ;;  %v824_v49 = vsel %vm1859_vm12, %v1766_v39, %v820_v22  ;;  %v827_v55 = vmul.f32 %v1825_v48, %v826_v27  ;;  %v559_v54 = vsub.f32 %v534_v50, %v1764_v38 }
 0x1b8   : > { %v660_v41 = vmul.f32 %v616_v53, %v1584_v58  ;;  %1313 = vrsqrt.f32 %v1874_v31  ;;  %v670_v39 = vmul.f32 %v1849_v30, %v659_v59  ;;  %v868_v38 = vmul.f32 %v824_v49, %v1581_v57 }
 0x1b9   : > { %v828_v0 = vmul.f32 0.5, %v827_v55  ;;  %v567_v35 = vmul.f32 0.03125, %v559_v54  ;;  %v552_v58 = vmul.f32 96.0, %v1776_v45  ;;  %v620_v4 = vmul.f32 0.5, %v619_v46 }
 0x1ba   : > { %v671_v26 = vmul.f32 %v1849_v30, %v660_v41  ;;  %vm624_vm15 = vweird.f32 %v1818_v6  ;;  %vm832_vm1 = vweird.f32 %v1825_v48  ;;  %v681_v25 = vadd.f32 %v1887_v62, %v670_v39 }
 0x1bb   : > { %v829_v45 = vsub.f32 1.5, %v828_v0  ;;  %v1909_v8 = vadd.f32 1e-06, %v567_v35  ;;  %v879_v43 = vmul.f32 %v1867_v29, %v868_v38  ;;  %v889_v20 = vadd.f32 %v1895_v3, %v878_v14  ;;  %vm1947_vm4 = vmor %vm831_vm13, %vm832_vm1 }
 0x1bc   : > { %v1897_v40 = vpop.eup %1309  ;;  %v621_v7 = vsub.f32 1.5, %v620_v4  ;;  %vm841_vm2 = vweird.f32 %v1823_v47  ;;  %vm633_vm3 = vweird.f32 %v1874_v31  ;;  %v682_v50 = vadd.f32 %v1887_v62, %v671_v26  ;;  %vm1962_vm6 = vmor %vm623_vm14, %vm624_vm15 }
 0x1bd   : > { %v1905_v57 = vpop.eup %1311  ;;  %v836_v13 = vmul.f32 %v1897_v40, %v1823_v47  ;;  %1315 = vrsqrt.f32 %v1909_v8  ;;  %v830_v56 = vmul.f32 %v1825_v48, %v829_v45  ;;  %v890_v0 = vadd.f32 %v1895_v3, %v879_v43 }
 0x1be   : > { %v578_v36 = vmul.f32 %v1905_v57, %v1831_v21  ;;  %v1922_v12 = vpop.eup %1313  ;;  %v536_v59 = vpop.xlane.xlu1 %535  ;;  %v897_v9 = vmul.f32 %v889_v20, %v681_v25  ;;  %vm583_vm0 = vweird.f32 %v1831_v21  ;;  %vm842_vm5 = vweird.f32 %v1897_v40 }
 0x1bf   : > { %v837_v11 = vmul.f32 %v1897_v40, %v836_v13  ;;  %v742_v18 = vpop.xlane.xlu2 %741  ;;  %v744_v19 = vpop.xlane.xlu0 %743  ;;  %v628_v28 = vmul.f32 %v1922_v12, %v1874_v31  ;;  %v560_v55 = vsub.f32 %v536_v59, %v552_v58  ;;  %v898_v13 = vmul.f32 %v890_v0, %v682_v50  ;;  %vm1981_vm9 = vmor %vm841_vm2, %vm842_vm5 }
 0x1c0   : > { %v579_v22 = vmul.f32 %v1905_v57, %v578_v36  ;;  %v767_v27 = vsub.f32 %v742_v18, %v759_v63  ;;  %v768_v44 = vsub.f32 %v744_v19, %v760_v61  ;;  %v622_v61 = vmul.f32 %v1818_v6, %v621_v7 }
 0x1c1   : > { %v838_v53 = vmul.f32 0.5, %v837_v11  ;;  %v629_v41 = vmul.f32 %v1922_v12, %v628_v28  ;;  %v568_v38 = vmul.f32 0.03125, %v560_v55  ;;  %v905_v26 = vadd.f32 %v897_v9, %v681_v25 }
 0x1c2   : > { %v580_v49 = vmul.f32 0.5, %v579_v22  ;;  %v775_v46 = vmul.f32 0.03125, %v767_v27  ;;  %v776_v54 = vmul.f32 0.03125, %v768_v44  ;;  %v834_v36 = vsel %vm1947_vm4, %v1825_v48, %v830_v56 }
 0x1c3   : > { %v839_v63 = vsub.f32 1.5, %v838_v53  ;;  %v1941_v14 = vpop.eup %1315  ;;  %v630_v45 = vmul.f32 0.5, %v629_v41  ;;  %vm634_vm7 = vweird.f32 %v1922_v12  ;;  %v1968_v48 = vadd.f32 1e-06, %v568_v38 }
 0x1c4   : > { %v1937_v39 = vadd.f32 1e-06, %v775_v46  ;;  %v1939_v35 = vadd.f32 1e-06, %v776_v54  ;;  %v581_v4 = vsub.f32 1.5, %v580_v49  ;;  %v638_v11 = vmul.f32 %v1941_v14, %v1909_v8  ;;  %vm1995_vm11 = vmor %vm633_vm3, %vm634_vm7 }
 0x1c5   : > { %v840_v25 = vmul.f32 %v1897_v40, %v839_v63  ;;  %v631_v18 = vsub.f32 1.5, %v630_v45  ;;  %v626_v43 = vsel %vm1962_vm6, %v1818_v6, %v622_v61  ;;  %vm584_vm8 = vweird.f32 %v1905_v57 }
 0x1c6   : > { %1317 = vrsqrt.f32 %v1937_v39  ;;  %v639_v23 = vmul.f32 %v1941_v14, %v638_v11  ;;  %v732_v20 = vpop.xlane.xlu1 %731  ;;  %v869_v22 = vmul.f32 %v834_v36, %v1598_v2  ;;  %v1986_v6 = vmul.f32 %v1905_v57, %v581_v4  ;;  %vm2014_vm13 = vmor %vm583_vm0, %vm584_vm8 }
 0x1c7   : > { %v524_v19 = vpop.xlane.xlu2 %523  ;;  %1319 = vrsqrt.f32 %v1939_v35  ;;  %v730_v7 = vpop.xlane.xlu0 %729  ;;  %v632_v59 = vmul.f32 %v1922_v12, %v631_v18  ;;  %vm643_vm10 = vweird.f32 %v1909_v8  ;;  %vm644_vm12 = vweird.f32 %v1941_v14 }
 0x1c8   : > { %1321 = vrsqrt.f32 %v1968_v48  ;;  %v640_v47 = vmul.f32 0.5, %v639_v23  ;;  %v906_v44 = vadd.f32 %v898_v13, %v682_v50  ;;  %v554_v56 = vsub.f32 %v524_v19, %v1879_v60  ;;  %vm2045_vm1 = vmor %vm643_vm10, %vm644_vm12 }
 0x1c9   : > { %v844_v53 = vsel %vm1981_vm9, %v1897_v40, %v840_v25  ;;  %v636_v28 = vsel %vm1995_vm11, %v1922_v12, %v632_v59  ;;  %v762_v31 = vsub.f32 %v732_v20, %v1900_v5  ;;  %v761_v49 = vsub.f32 %v730_v7, %v1903_v10 }
 0x1ca   : > { %v641_v55 = vsub.f32 1.5, %v640_v47  ;;  %v912_v54 = vpack.c.bf16 %v906_v44, %v905_v26  ;;  %v562_v63 = vmul.f32 0.03125, %v554_v56  ;;  %v661_v50 = vmul.f32 %v626_v43, %v1595_v1 }
 0x1cb   : > { %vm851_vm14 = vweird.f32 %v1937_v39  ;;  %v770_v5 = vmul.f32 0.03125, %v762_v31  ;;  %v662_v10 = vmul.f32 %v636_v28, %v1614_v16  ;;  %v870_v41 = vmul.f32 %v844_v53, %v1611_v15 }
 0x1cc   : > { %v1318_v46 = vpop.eup %1317  ;;  %v586_v1 = vsel %vm2014_vm13, %v1905_v57, %v1986_v6  ;;  %1029 = vmatmul.bf16.vlgmr.msra.gmra.mxu3 %v912_v54  ;;  %v2026_v21 = vadd.f32 1e-06, %v562_v63  ;;  %v769_v0 = vmul.f32 0.03125, %v761_v49  ;;  %v642_v61 = vmul.f32 %v1941_v14, %v641_v55 }
 0x1cd   : > { %v846_v40 = vmul.f32 %v1318_v46, %v1937_v39  ;;  %v1320_v12 = vpop.eup %1319  ;;  %v2032_v16 = vadd.f32 1e-06, %v770_v5  ;;  %vm653_vm15 = vweird.f32 %v1968_v48  ;;  %v672_v4 = vmul.f32 %v1849_v30, %v661_v50 }
 0x1ce   : > { %v2028_v9 = vpop.eup %1321  ;;  %v856_v58 = vmul.f32 %v1320_v12, %v1939_v35  ;;  %1323 = vrsqrt.f32 %v2026_v21  ;;  %v673_v26 = vmul.f32 %v1849_v30, %v662_v10  ;;  %vm852_vm2 = vweird.f32 %v1318_v46 }
 0x1cf   : > { %v847_v38 = vmul.f32 %v1318_v46, %v846_v40  ;;  %v648_v15 = vmul.f32 %v2028_v9, %v1968_v48  ;;  %1325 = vrsqrt.f32 %v2032_v16  ;;  %vm862_vm3 = vweird.f32 %v1320_v12  ;;  %vm853_vm0 = vmor %vm851_vm14, %vm852_vm2 }
 0x1d0   : > { %v857_v13 = vmul.f32 %v1320_v12, %v856_v58  ;;  %v2050_v37 = vadd.f32 1e-06, %v769_v0  ;;  %v646_v25 = vsel %vm2045_vm1, %v1941_v14, %v642_v61  ;;  %v880_v43 = vmul.f32 %v1867_v29, %v869_v22 }
 0x1d1   : > { %v848_v45 = vmul.f32 0.5, %v847_v38  ;;  %v649_v11 = vmul.f32 %v2028_v9, %v648_v15  ;;  %v683_v8 = vadd.f32 %v1887_v62, %v672_v4  ;;  %v881_v20 = vmul.f32 %v1867_v29, %v870_v41 }
 0x1d2   : > { %v858_v19 = vmul.f32 0.5, %v857_v13  ;;  %1327 = vrsqrt.f32 %v2050_v37  ;;  %v684_v59 = vadd.f32 %v1887_v62, %v673_v26  ;;  %v891_v2 = vadd.f32 %v1895_v3, %v880_v43 }
 0x1d3   : > { %v849_v18 = vsub.f32 1.5, %v848_v45  ;;  %v650_v23 = vmul.f32 0.5, %v649_v11  ;;  %vm654_vm4 = vweird.f32 %v2028_v9  ;;  %v892_v22 = vadd.f32 %v1895_v3, %v881_v20 }
 0x1d4   : > { %v859_v27 = vsub.f32 1.5, %v858_v19  ;;  %v1324_v47 = vpop.eup %1323  ;;  %v663_v44 = vmul.f32 %v646_v25, %v1629_v24  ;;  %vm861_vm5 = vweird.f32 %v1939_v35  ;;  %vm593_vm7 = vweird.f32 %v2026_v21  ;;  %vm2076_vm8 = vmor %vm653_vm15, %vm654_vm4 }
 0x1d5   : > { %v850_v7 = vmul.f32 %v1318_v46, %v849_v18  ;;  %v651_v14 = vsub.f32 1.5, %v650_v23  ;;  %v1326_v56 = vpop.eup %1325  ;;  %v588_v31 = vmul.f32 %v1324_v47, %v2026_v21  ;;  %vm863_vm6 = vmor %vm861_vm5, %vm862_vm3  ;;  %v899_v54 = vmul.f32 %v891_v2, %v683_v8 }
 0x1d6   : > { %v860_v28 = vmul.f32 %v1320_v12, %v859_v27  ;;  %v796_v39 = vmul.f32 %v1326_v56, %v2032_v16  ;;  %v900_v63 = vmul.f32 %v892_v22, %v684_v59  ;;  %v674_v10 = vmul.f32 %v1849_v30, %v663_v44 }
 0x1d7   : > { %v854_v53 = vsel %vm853_vm0, %v1318_v46, %v850_v7  ;;  %v652_v55 = vmul.f32 %v2028_v9, %v651_v14  ;;  %v589_v35 = vmul.f32 %v1324_v47, %v588_v31  ;;  %vm594_vm9 = vweird.f32 %v1324_v47 }
 0x1d8   : > { %v871_v49 = vmul.f32 %v854_v53, %v1645_v33  ;;  %v864_v46 = vsel %vm863_vm6, %v1320_v12, %v860_v28  ;;  %v1328_v50 = vpop.eup %1327  ;;  %v797_v5 = vmul.f32 %v1326_v56, %v796_v39  ;;  %v907_v0 = vadd.f32 %v899_v54, %v683_v8  ;;  %vm595_vm11 = vmor %vm593_vm7, %vm594_vm9 }
 0x1d9   : > { %v656_v33 = vsel %vm2076_vm8, %v2028_v9, %v652_v55  ;;  %v872_v40 = vmul.f32 %v864_v46, %v1641_v32  ;;  %v590_v41 = vmul.f32 0.5, %v589_v35  ;;  %v786_v48 = vmul.f32 %v1328_v50, %v2050_v37 }
 0x1da   : > { %v798_v61 = vmul.f32 0.5, %v797_v5  ;;  %vm802_vm10 = vweird.f32 %v1326_v56  ;;  %v908_v12 = vadd.f32 %v900_v63, %v684_v59  ;;  %v664_v38 = vmul.f32 %v656_v33, %v1649_v34 }
 0x1db   : > { %v591_v58 = vsub.f32 1.5, %v590_v41  ;;  %v787_v15 = vmul.f32 %v1328_v50, %v786_v48  ;;  %v882_v4 = vmul.f32 %v1867_v29, %v871_v49  ;;  %v883_v9 = vmul.f32 %v1867_v29, %v872_v40 }
 0x1dc   : > { %v799_v32 = vsub.f32 1.5, %v798_v61  ;;  %v913_v45 = vpack.c.bf16 %v908_v12, %v907_v0  ;;  %v675_v13 = vmul.f32 %v1849_v30, %v664_v38  ;;  %v685_v26 = vadd.f32 %v1887_v62, %v674_v10 }
 0x1dd   : > { %v592_v36 = vmul.f32 %v1324_v47, %v591_v58  ;;  %v788_v11 = vmul.f32 0.5, %v787_v15  ;;  %v893_v25 = vadd.f32 %v1895_v3, %v882_v4  ;;  %v894_v18 = vadd.f32 %v1895_v3, %v883_v9 }
 0x1de   : > { %v800_v34 = vmul.f32 %v1326_v56, %v799_v32  ;;  %vm801_vm12 = vweird.f32 %v2032_v16  ;;  %1034 = vmatmul.bf16.gmra.mxu3 %v913_v45  ;;  %v686_v19 = vadd.f32 %v1887_v62, %v675_v13  ;;  %vm792_vm15 = vweird.f32 %v1328_v50 }
 0x1df   : > { %v596_v43 = vsel %vm595_vm11, %v1324_v47, %v592_v36  ;;  %vm803_vm14 = vmor %vm801_vm12, %vm802_vm10  ;;  %v789_v23 = vsub.f32 1.5, %v788_v11  ;;  %v901_v8 = vmul.f32 %v893_v25, %v685_v26  ;;  %v657_v21 = vmul.f32 %v586_v1, %v1617_v17 }
 0x1e0   : > { %v658_v20 = vmul.f32 %v596_v43, %v1661_v42  ;;  %v804_v7 = vsel %vm803_vm14, %v1326_v56, %v800_v34  ;;  %v902_v16 = vmul.f32 %v894_v18, %v686_v19  ;;  %vm791_vm1 = vweird.f32 %v2050_v37 }
 0x1e1   : > { %v866_v27 = vmul.f32 %v804_v7, %v1673_v52  ;;  %v790_v59 = vmul.f32 %v1328_v50, %v789_v23  ;;  %v909_v2 = vadd.f32 %v901_v8, %v685_v26  ;;  %vm793_vm2 = vmor %vm791_vm1, %vm792_vm15  ;;  %v668_v42 = vmul.f32 %v1849_v30, %v657_v21 }
 0x1e2   : > { %v910_v47 = vadd.f32 %v902_v16, %v686_v19  ;;  %v669_v14 = vmul.f32 %v1849_v30, %v658_v20  ;;  %v948_v30 = vpop.f32.mrf.mxu2 }
 0x1e3   : > { %v794_v22 = vsel %vm793_vm2, %v1328_v50, %v790_v59  ;;  %v877_v60 = vmul.f32 %v1867_v29, %v866_v27  ;;  %v679_v44 = vadd.f32 %v1887_v62, %v668_v42 }
 0x1e4   : > { %v865_v57 = vmul.f32 %v794_v22, %v1669_v51  ;;  %v914_v17 = vpack.c.bf16 %v910_v47, %v909_v2  ;;  %v680_v6 = vadd.f32 %v1887_v62, %v669_v14 }
 0x1e5   : > { %v888_v52 = vadd.f32 %v1895_v3, %v877_v60 }
 0x1e6   : > { %v876_v1 = vmul.f32 %v1867_v29, %v865_v57  ;;  %v1296_v29 = vld [vmem:[%s2176_s9] ss:$0 sm:$0xff] }
 0x1e7   : > { %v896_v37 = vmul.f32 %v888_v52, %v680_v6 }
 0x1e8   : > { %v887_v56 = vadd.f32 %v1895_v3, %v876_v1 }
 0x1e9   : > { %v904_v53 = vadd.f32 %v896_v37, %v680_v6 }
 0x1ea   : > { %v895_v28 = vmul.f32 %v887_v56, %v679_v44  ;;  %v950_v49 = vpop.f32.mrf.mxu2 }
 0x1ec   : > { %v903_v31 = vadd.f32 %v895_v28, %v679_v44 }
 0x1ee   : > { %1039 = vmatmul.bf16.gmra.mxu3 %v914_v17  ;;  %v911_v51 = vpack.c.bf16 %v904_v53, %v903_v31 }
 0x1f0   : > { %1024 = vmatmul.bf16.vlgmr.msrb.gmra.mxu0 %v911_v51 }
 0x1f2   : > { %v953_v55 = vpop.f32.mrf.mxu2 }
 0x1fa   : > { %v955_v24 = vpop.f32.mrf.mxu2 }
 0x202   : > { %v958_v63 = vpop.f32.mrf.mxu2 }
 0x20a   : > { %v960_v5 = vpop.f32.mrf.mxu2 }
 0x212   : > { %v963_v12 = vpop.f32.mrf.mxu2 }
 0x21a   : > { %v965_v13 = vpop.f32.mrf.mxu2 }
 0x24f   : > { %v1030_v39 = vpop.f32.mrf.mxu3 }
 0x250   : > { %v1031_v62 = vadd.f32 %v1030_v39, %v953_v55 }
 0x252   : > { %v1051_v3 = vadd.f32 %v1296_v29, %v1031_v62 }
 0x254   : > { %1059 = vst [vmem:[%s2123_s26 + $0x10] sm:$0xff] %v1051_v3 }
 0x257   : > { %v1032_v46 = vpop.f32.mrf.mxu3 }
 0x258   : > { %v1033_v35 = vadd.f32 %v1032_v46, %v955_v24 }
 0x25a   : > { %v1052_v54 = vadd.f32 %v1296_v29, %v1033_v35 }
 0x25c   : > { %1060 = vst [vmem:[%s2123_s26 + $0x18] sm:$0xff] %v1052_v54 }
 0x261   : > { %v1035_v50 = vpop.f32.mrf.mxu3 }
 0x262   : > { %v1036_v33 = vadd.f32 %v1035_v50, %v958_v63 }
 0x264   : > { %v1053_v40 = vadd.f32 %v1296_v29, %v1036_v33 }
 0x266   : > { %1061 = vst [vmem:[%s2123_s26 + $0x20] sm:$0xff] %v1053_v40 }
 0x269   : > { %v1037_v10 = vpop.f32.mrf.mxu3 }
 0x26a   : > { %v1038_v41 = vadd.f32 %v1037_v10, %v960_v5 }
 0x26c   : > { %v1054_v48 = vadd.f32 %v1296_v29, %v1038_v41 }
 0x26d   : > { %v1025_v0 = vpop.f32.mrf.mxu0 }
 0x26e   : > { %1062 = vst [vmem:[%s2123_s26 + $0x28] sm:$0xff] %v1054_v48  ;;  %v1026_v61 = vadd.f32 %v1025_v0, %v948_v30 }
 0x270   : > { %v1049_v38 = vadd.f32 %v1296_v29, %v1026_v61 }
 0x271   : > { %v1040_v58 = vpop.f32.mrf.mxu3 }
 0x272   : > { %v1041_v15 = vadd.f32 %v1040_v58, %v963_v12  ;;  %1057 = vst [vmem:[%s2123_s26] sm:$0xff] %v1049_v38 }
 0x274   : > { %v1055_v4 = vadd.f32 %v1296_v29, %v1041_v15 }
 0x275   : > { %v1027_v9 = vpop.f32.mrf.mxu0 }
 0x276   : > { %1063 = vst [vmem:[%s2123_s26 + $0x30] sm:$0xff] %v1055_v4  ;;  %v1028_v32 = vadd.f32 %v1027_v9, %v950_v49 }
 0x278   : > { %v1050_v45 = vadd.f32 %v1296_v29, %v1028_v32 }
 0x279   : > { %v1042_v26 = vpop.f32.mrf.mxu3 }
 0x27a   : > { %v1043_v36 = vadd.f32 %v1042_v26, %v965_v13  ;;  %1058 = vst [vmem:[%s2123_s26 + $0x8] sm:$0xff] %v1050_v45 }
 0x27c   : > { %v1056_v11 = vadd.f32 %v1296_v29, %v1043_v36 }
 0x27e   : > { %1064 = vst [vmem:[%s2123_s26 + $0x38] sm:$0xff] %v1056_v11 }
 0x27f   : > { %1356 = shalt.err (!%p1353_p3)
}
 0x280   : > { %s1393_s18 = smov 128   ;;  %s1394_s26 = smov 8  }
 0x281   : > { %1251 = dma.vmem_to_hbm [thread:$0]  (%p1488_p5), %s1079_s11, 1024, %s1081_s12, %s1066_s17, %s1393_s18, %s1393_s18, %s1394_s26  }
 0x282 PF: > { %p1257_p4 = scmp.ge.s32.totalorder %s1391_s16, 2  ;;  %s1095_s25 = sand.u32 1, %s1379_s13  }
 0x283   : > { %s1096_s27 = scalar_lea.sflag [#allocation3], %s1095_s25 }
 0x284   : > { %p1254_p7 = pnand %p1257_p4, %p1492_p6 }
 0x286   : > { %p1255_p8 = pneg %p1254_p7 }
 0x288   : > { %1374 = dma.done.wait (%p1255_p8), %s1096_s27, 1024  }
 0x289   : > { %1376 = vsyncadd (%p1255_p8), %s1096_s27, 4294966272  ;;  %p20_p9 = scmp.ge.s32.totalorder %s1475_s19, 4   ;;  %s2202_s13 = smov %s1383_s14 }
 0x28a   : > { %s2203_s14 = smov %s1387_s15  ;;  %s2204_s15 = smov %s1486_s22 }
 0x28b   : > { %s2205_s16 = smov %s1475_s19  ;;  %22 = sbr.rel (!%p20_p9) target bundleno = 3 (0x3), region = 95 }
 0x290   :  { %1102 = vsyncpa [#allocation3], 1 }
 0x291   :  { %1104 = vsyncpa [#allocation3 + $0x1], 1 }

</bundles_post_ra>
